<compile_context>
chip_gen: v7x
topology: tpu7x:2x2x1
jax: 0.10.0
libtpu: 0.0.40
codegen_flags: <defaults>
</compile_context>

<pallas_src>
import functools

import jax
import jax.numpy as jnp
from jax.experimental import pallas as pl
from jax.experimental.pallas import tpu as pltpu


def _loss_block_kernel(x_ref, o_ref, *, beta: float):
    """x_ref: (3, 8, tn) packed [pred; target; weight], channels on sublanes.

    Writes the per-block partial sum (broadcast over a (1, 128) lane-dense row).
    """
    p = x_ref[0]                      # (8, tn)
    t = x_ref[1]
    w = x_ref[2]

    # ---- full-block elementwise intermediates (good sublane utilization) ----
    d = p - t                          # (8, tn)
    dsq = d * d
    psq = p * p
    tsq = t * t
    dabs = jnp.abs(d)

    # ---------------- center_loss on channels 0,1 ----------------
    e_c2 = dsq[0:1, :] + dsq[1:2, :]                       # (1, tn)
    e_c = jnp.sqrt(e_c2)
    l_c = jnp.where(e_c <= 1.0, 0.5 * e_c2, e_c - 0.5)
    w_c = 0.5 * (w[0:1, :] + w[1:2, :])                    # weight[:,0:2].mean(1)

    # ---------------- D_loss on channels 2,3,4 --------------------
    # pred:   (dLp, dap, dbp) = cols (2, 3, 4)
    # target: (dag, dLg, dbg) = cols (2, 3, 4)   (asymmetry matches the module)
    Ap2 = psq[4:5, :] + jnp.abs(psq[2:3, :] - psq[3:4, :])
    Ag2 = tsq[4:5, :] + jnp.abs(tsq[3:4, :] - tsq[2:3, :])
    Ap = jnp.sqrt(Ap2)
    Ag = jnp.sqrt(Ag2)
    e_D = (jnp.sqrt(psq[2:3, :] + psq[3:4, :] + Ap2 + psq[4:5, :])
           - jnp.sqrt(tsq[2:3, :] + tsq[3:4, :] + Ag2 + tsq[4:5, :]))
    l_d = 0.5 * jnp.abs(Ap - Ag) + 0.1 * jnp.abs(e_D)
    w_d = (w[2:3, :] + w[3:4, :] + w[4:5, :]) * (1.0 / 3.0)  # weight[:,2:5].mean(1)

    # ---------------- smooth_l1 on channels 2,3,4 -----------------
    sl1 = jnp.where(dabs < beta, 0.5 * dsq / beta, dabs - 0.5 * beta)   # (8, tn)
    bsum = jnp.sum(sl1[2:5, :] * w[2:5, :], axis=0, keepdims=True)      # (1, tn)

    # Padded lanes (p=t=w=0) contribute exactly 0 in every term -> no mask needed.
    contrib = l_c * w_c + l_d * w_d + bsum * (1.0 / 3.0)                # (1, tn)
    o_ref[...] = jnp.full(o_ref.shape, jnp.sum(contrib), dtype=jnp.float32)


@functools.partial(jax.jit, static_argnames=("beta", "loss_weight", "tn_max"))
def smooth_l1_aj_loss(pred, target, weight, n_valid=None, *,
                      beta=1.0, loss_weight=1.0, tn_max=8192):
    """Pallas TPU forward of SmoothL1AJLoss (reduction='mean', avg_factor=None).

    `n_valid` (optional, traced scalar): true sample count if the caller bucket-pads
    N on the host (padded rows must carry weight == 0).  Defaults to pred.shape[0].
    """
    n, c = pred.shape
    assert c >= 5 and target.shape == pred.shape and weight.shape == pred.shape
    if n_valid is None:
        n_valid = n

    # Lane tile: one block for small/medium N; power-of-2 buckets bound recompiles.
    tn = max(128, min(int(tn_max), pl.next_power_of_2(int(n))))
    nb = pl.cdiv(n, tn)
    n_pad = nb * tn

    # Pack [pred; target; weight] -> (3, 8, n_pad): channels on sublanes (5 -> 8),
    # samples on lanes.  Single fused stack/transpose/pad; single kernel input.
    x = jnp.stack([pred[:, :5], target[:, :5], weight[:, :5]], axis=0)
    x = jnp.transpose(x.astype(jnp.float32), (0, 2, 1))            # (3, 5, n)
    x = jnp.pad(x, ((0, 0), (0, 3), (0, n_pad - n)))                # (3, 8, n_pad)

    partials = pl.pallas_call(
        functools.partial(_loss_block_kernel, beta=float(beta)),
        out_shape=jax.ShapeDtypeStruct((nb, 128), jnp.float32),
        grid=(nb,),
        in_specs=[pl.BlockSpec((3, 8, tn), lambda i: (0, 0, i))],
        out_specs=pl.BlockSpec((1, 128), lambda i: (i, 0)),
        compiler_params=pltpu.CompilerParams(dimension_semantics=("parallel",)),
    )(x)

    total = jnp.sum(partials[:, 0]) / jnp.asarray(n_valid, jnp.float32)
    return (loss_weight * total).astype(jnp.float32)
    # TODO(synk): reduction='none'/'sum' and avg_factor paths of the module are not
    # implemented; only the default reduction='mean', avg_factor=None forward.


def reference_loss(pred, target, weight, beta=1.0, loss_weight=1.0):
    """Pure-JAX reference matching the PyTorch module (reduction='mean')."""
    pred = pred.astype(jnp.float32)
    target = target.astype(jnp.float32)
    weight = weight.astype(jnp.float32)
    # center_loss
    e_c = jnp.sqrt((pred[:, 0] - target[:, 0]) ** 2 + (pred[:, 1] - target[:, 1]) ** 2)
    l_c = jnp.where(e_c <= 1.0, 0.5 * e_c ** 2, e_c - 0.5)
    loss_center = jnp.mean(l_c * weight[:, 0:2].mean(axis=1))
    # D_loss
    dLp, dap, dbp = pred[:, 2], pred[:, 3], pred[:, 4]
    Ap = jnp.sqrt(dbp ** 2 + jnp.abs(dLp ** 2 - dap ** 2))
    dag, dLg, dbg = target[:, 2], target[:, 3], target[:, 4]
    Ag = jnp.sqrt(dbg ** 2 + jnp.abs(dLg ** 2 - dag ** 2))
    e_D = (jnp.sqrt(dLp ** 2 + dap ** 2 + Ap ** 2 + dbp ** 2)
           - jnp.sqrt(dLg ** 2 + dag ** 2 + Ag ** 2 + dbg ** 2))
    l_d = 0.5 * jnp.abs(Ap - Ag) + 0.1 * jnp.abs(e_D)
    loss_D = jnp.mean(l_d * weight[:, 2:5].mean(axis=1))
    # smooth_l1
    diff = jnp.abs(pred[:, 2:5] - target[:, 2:5])
    sl1 = jnp.where(diff < beta, 0.5 * diff * diff / beta, diff - 0.5 * beta)
    loss_bbox = jnp.mean(sl1 * weight[:, 2:5])
    return loss_weight * (loss_D + loss_center + loss_bbox)


if __name__ == "__main__":
    key = jax.random.PRNGKey(0)
    k1, k2, k3 = jax.random.split(key, 3)

    # Primary test: small N (not a multiple of 128), C == 5 -> single-block path.
    N, C = 37, 5
    pred = jax.random.normal(k1, (N, C), dtype=jnp.float32)
    target = jax.random.normal(k2, (N, C), dtype=jnp.float32)
    weight = jax.random.uniform(k3, (N, C), dtype=jnp.float32)

    out = jax.block_until_ready(smooth_l1_aj_loss(pred, target, weight,
                                                  beta=1.0, loss_weight=1.0))
    ref = jax.block_until_ready(reference_loss(pred, target, weight))
    assert jnp.allclose(out, ref, rtol=1e-4, atol=1e-5), (out, ref)

    # Secondary test: C > 5, multi-block parallel partial-sum path (tn_max=128).
    k4, k5, k6 = jax.random.split(jax.random.PRNGKey(1), 3)
    N2, C2 = 300, 7
    pred2 = jax.random.normal(k4, (N2, C2), dtype=jnp.float32)
    target2 = jax.random.normal(k5, (N2, C2), dtype=jnp.float32)
    weight2 = jax.random.uniform(k6, (N2, C2), dtype=jnp.float32)

    out2 = jax.block_until_ready(smooth_l1_aj_loss(pred2, target2, weight2, tn_max=128))
    ref2 = jax.block_until_ready(reference_loss(pred2, target2, weight2))
    assert jnp.allclose(out2, ref2, rtol=1e-4, atol=1e-5), (out2, ref2)

    print("KERNEL_OK")
</pallas_src>

<mosaic_0001>
module attributes {stable_mosaic.version = 11 : i64} {
  func.func @_loss_block_kernel(%arg0: i32, %arg1: memref<3x8x128xf32, #tpu.memory_space<vmem>>, %arg2: memref<1x128xf32, #tpu.memory_space<vmem>>) attributes {dimension_semantics = [#tpu.dimension_semantics<parallel>], iteration_bounds = array<i64: 1>, scalar_prefetch = 0 : i64, scratch_operands = 0 : i64, tpu.core_type = #tpu.core_type<tc>, window_params = [{transform_indices = @transform_0, window_bounds = array<i64: 3, 8, 128>}, {transform_indices = @transform_1, window_bounds = array<i64: 1, 128>}]} {
    %c0 = arith.constant 0 : index
    %c0_0 = arith.constant 0 : index
    %c0_1 = arith.constant 0 : index
    %0 = vector.load %arg1[%c0, %c0_0, %c0_1] : memref<3x8x128xf32, #tpu.memory_space<vmem>>, vector<1x8x128xf32>
    %1 = vector.shape_cast %0 : vector<1x8x128xf32> to vector<8x128xf32>
    %c1 = arith.constant 1 : index
    %c0_2 = arith.constant 0 : index
    %c0_3 = arith.constant 0 : index
    %2 = vector.load %arg1[%c1, %c0_2, %c0_3] : memref<3x8x128xf32, #tpu.memory_space<vmem>>, vector<1x8x128xf32>
    %3 = vector.shape_cast %2 : vector<1x8x128xf32> to vector<8x128xf32>
    %c2 = arith.constant 2 : index
    %c0_4 = arith.constant 0 : index
    %c0_5 = arith.constant 0 : index
    %4 = vector.load %arg1[%c2, %c0_4, %c0_5] : memref<3x8x128xf32, #tpu.memory_space<vmem>>, vector<1x8x128xf32>
    %5 = vector.shape_cast %4 : vector<1x8x128xf32> to vector<8x128xf32>
    %6 = arith.subf %1, %3 : vector<8x128xf32>
    %7 = arith.mulf %6, %6 : vector<8x128xf32>
    %8 = arith.mulf %1, %1 : vector<8x128xf32>
    %9 = arith.mulf %3, %3 : vector<8x128xf32>
    %10 = math.absf %6 : vector<8x128xf32>
    %11 = vector.extract_strided_slice %7 {offsets = [0, 0], sizes = [1, 128], strides = [1, 1]} : vector<8x128xf32> to vector<1x128xf32>
    %12 = vector.extract_strided_slice %7 {offsets = [1, 0], sizes = [1, 128], strides = [1, 1]} : vector<8x128xf32> to vector<1x128xf32>
    %13 = arith.addf %11, %12 : vector<1x128xf32>
    %14 = math.sqrt %13 : vector<1x128xf32>
    %cst = arith.constant 1.000000e+00 : f32
    %15 = vector.broadcast %cst : f32 to vector<1x128xf32>
    %16 = arith.cmpf ole, %14, %15 : vector<1x128xf32>
    %cst_6 = arith.constant 5.000000e-01 : f32
    %17 = vector.broadcast %cst_6 : f32 to vector<1x128xf32>
    %18 = arith.mulf %17, %13 : vector<1x128xf32>
    %cst_7 = arith.constant 5.000000e-01 : f32
    %19 = vector.broadcast %cst_7 : f32 to vector<1x128xf32>
    %20 = arith.subf %14, %19 : vector<1x128xf32>
    %21 = arith.select %16, %18, %20 : vector<1x128xi1>, vector<1x128xf32>
    %22 = vector.extract_strided_slice %5 {offsets = [0, 0], sizes = [1, 128], strides = [1, 1]} : vector<8x128xf32> to vector<1x128xf32>
    %23 = vector.extract_strided_slice %5 {offsets = [1, 0], sizes = [1, 128], strides = [1, 1]} : vector<8x128xf32> to vector<1x128xf32>
    %24 = arith.addf %22, %23 : vector<1x128xf32>
    %cst_8 = arith.constant 5.000000e-01 : f32
    %25 = vector.broadcast %cst_8 : f32 to vector<1x128xf32>
    %26 = arith.mulf %25, %24 : vector<1x128xf32>
    %27 = vector.extract_strided_slice %8 {offsets = [4, 0], sizes = [1, 128], strides = [1, 1]} : vector<8x128xf32> to vector<1x128xf32>
    %28 = vector.extract_strided_slice %8 {offsets = [2, 0], sizes = [1, 128], strides = [1, 1]} : vector<8x128xf32> to vector<1x128xf32>
    %29 = vector.extract_strided_slice %8 {offsets = [3, 0], sizes = [1, 128], strides = [1, 1]} : vector<8x128xf32> to vector<1x128xf32>
    %30 = arith.subf %28, %29 : vector<1x128xf32>
    %31 = math.absf %30 : vector<1x128xf32>
    %32 = arith.addf %27, %31 : vector<1x128xf32>
    %33 = vector.extract_strided_slice %9 {offsets = [4, 0], sizes = [1, 128], strides = [1, 1]} : vector<8x128xf32> to vector<1x128xf32>
    %34 = vector.extract_strided_slice %9 {offsets = [3, 0], sizes = [1, 128], strides = [1, 1]} : vector<8x128xf32> to vector<1x128xf32>
    %35 = vector.extract_strided_slice %9 {offsets = [2, 0], sizes = [1, 128], strides = [1, 1]} : vector<8x128xf32> to vector<1x128xf32>
    %36 = arith.subf %34, %35 : vector<1x128xf32>
    %37 = math.absf %36 : vector<1x128xf32>
    %38 = arith.addf %33, %37 : vector<1x128xf32>
    %39 = math.sqrt %32 : vector<1x128xf32>
    %40 = math.sqrt %38 : vector<1x128xf32>
    %41 = vector.extract_strided_slice %8 {offsets = [2, 0], sizes = [1, 128], strides = [1, 1]} : vector<8x128xf32> to vector<1x128xf32>
    %42 = vector.extract_strided_slice %8 {offsets = [3, 0], sizes = [1, 128], strides = [1, 1]} : vector<8x128xf32> to vector<1x128xf32>
    %43 = arith.addf %41, %42 : vector<1x128xf32>
    %44 = arith.addf %43, %32 : vector<1x128xf32>
    %45 = vector.extract_strided_slice %8 {offsets = [4, 0], sizes = [1, 128], strides = [1, 1]} : vector<8x128xf32> to vector<1x128xf32>
    %46 = arith.addf %44, %45 : vector<1x128xf32>
    %47 = math.sqrt %46 : vector<1x128xf32>
    %48 = vector.extract_strided_slice %9 {offsets = [2, 0], sizes = [1, 128], strides = [1, 1]} : vector<8x128xf32> to vector<1x128xf32>
    %49 = vector.extract_strided_slice %9 {offsets = [3, 0], sizes = [1, 128], strides = [1, 1]} : vector<8x128xf32> to vector<1x128xf32>
    %50 = arith.addf %48, %49 : vector<1x128xf32>
    %51 = arith.addf %50, %38 : vector<1x128xf32>
    %52 = vector.extract_strided_slice %9 {offsets = [4, 0], sizes = [1, 128], strides = [1, 1]} : vector<8x128xf32> to vector<1x128xf32>
    %53 = arith.addf %51, %52 : vector<1x128xf32>
    %54 = math.sqrt %53 : vector<1x128xf32>
    %55 = arith.subf %47, %54 : vector<1x128xf32>
    %56 = arith.subf %39, %40 : vector<1x128xf32>
    %57 = math.absf %56 : vector<1x128xf32>
    %cst_9 = arith.constant 5.000000e-01 : f32
    %58 = vector.broadcast %cst_9 : f32 to vector<1x128xf32>
    %59 = arith.mulf %58, %57 : vector<1x128xf32>
    %60 = math.absf %55 : vector<1x128xf32>
    %cst_10 = arith.constant 1.000000e-01 : f32
    %61 = vector.broadcast %cst_10 : f32 to vector<1x128xf32>
    %62 = arith.mulf %61, %60 : vector<1x128xf32>
    %63 = arith.addf %59, %62 : vector<1x128xf32>
    %64 = vector.extract_strided_slice %5 {offsets = [2, 0], sizes = [1, 128], strides = [1, 1]} : vector<8x128xf32> to vector<1x128xf32>
    %65 = vector.extract_strided_slice %5 {offsets = [3, 0], sizes = [1, 128], strides = [1, 1]} : vector<8x128xf32> to vector<1x128xf32>
    %66 = arith.addf %64, %65 : vector<1x128xf32>
    %67 = vector.extract_strided_slice %5 {offsets = [4, 0], sizes = [1, 128], strides = [1, 1]} : vector<8x128xf32> to vector<1x128xf32>
    %68 = arith.addf %66, %67 : vector<1x128xf32>
    %cst_11 = arith.constant 0.333333343 : f32
    %69 = vector.broadcast %cst_11 : f32 to vector<1x128xf32>
    %70 = arith.mulf %68, %69 : vector<1x128xf32>
    %cst_12 = arith.constant 1.000000e+00 : f32
    %71 = vector.broadcast %cst_12 : f32 to vector<8x128xf32>
    %72 = arith.cmpf olt, %10, %71 : vector<8x128xf32>
    %cst_13 = arith.constant 5.000000e-01 : f32
    %73 = vector.broadcast %cst_13 : f32 to vector<8x128xf32>
    %74 = arith.mulf %73, %7 : vector<8x128xf32>
    %cst_14 = arith.constant 1.000000e+00 : f32
    %75 = vector.broadcast %cst_14 : f32 to vector<8x128xf32>
    %76 = arith.divf %74, %75 : vector<8x128xf32>
    %cst_15 = arith.constant 5.000000e-01 : f32
    %77 = vector.broadcast %cst_15 : f32 to vector<8x128xf32>
    %78 = arith.subf %10, %77 : vector<8x128xf32>
    %79 = arith.select %72, %76, %78 : vector<8x128xi1>, vector<8x128xf32>
    %80 = vector.extract_strided_slice %79 {offsets = [2, 0], sizes = [3, 128], strides = [1, 1]} : vector<8x128xf32> to vector<3x128xf32>
    %81 = vector.extract_strided_slice %5 {offsets = [2, 0], sizes = [3, 128], strides = [1, 1]} : vector<8x128xf32> to vector<3x128xf32>
    %82 = arith.mulf %80, %81 : vector<3x128xf32>
    %cst_16 = arith.constant dense<0.000000e+00> : vector<128xf32>
    %83 = vector.multi_reduction <add>, %82, %cst_16 [0] : vector<3x128xf32> to vector<128xf32>
    %84 = vector.shape_cast %83 : vector<128xf32> to vector<1x128xf32>
    %85 = arith.mulf %21, %26 : vector<1x128xf32>
    %86 = arith.mulf %63, %70 : vector<1x128xf32>
    %87 = arith.addf %85, %86 : vector<1x128xf32>
    %cst_17 = arith.constant 0.333333343 : f32
    %88 = vector.broadcast %cst_17 : f32 to vector<1x128xf32>
    %89 = arith.mulf %84, %88 : vector<1x128xf32>
    %90 = arith.addf %87, %89 : vector<1x128xf32>
    %91 = vector.shape_cast %90 : vector<1x128xf32> to vector<1x1x128xf32>
    %cst_18 = arith.constant dense<0.000000e+00> : vector<1xf32>
    %92 = vector.multi_reduction <add>, %91, %cst_18 [1, 2] : vector<1x1x128xf32> to vector<1xf32>
    %93 = vector.shape_cast %92 : vector<1xf32> to vector<1x1x1xf32>
    %94 = vector.extract %93[0, 0, 0] : f32 from vector<1x1x1xf32>
    %95 = vector.broadcast %94 : f32 to vector<1x128xf32>
    %c0_19 = arith.constant 0 : index
    %c0_20 = arith.constant 0 : index
    %96 = vector.load %arg2[%c0_19, %c0_20] : memref<1x128xf32, #tpu.memory_space<vmem>>, vector<1x128xf32>
    tpu.vector_store %arg2[%c0_19, %c0_20], %95 {strides = array<i32>} : memref<1x128xf32, #tpu.memory_space<vmem>>, vector<1x128xf32>,
    return
  }
  func.func @transform_0(%arg0: i32) -> (i32, i32, i32) {
    %c0_i32 = arith.constant 0 : i32
    %c0_i32_0 = arith.constant 0 : i32
    %c0_i32_1 = arith.constant 0 : i32
    return %c0_i32, %c0_i32_0, %arg0 : i32, i32, i32
  }
  func.func @transform_1(%arg0: i32) -> (i32, i32) {
    %c0_i32 = arith.constant 0 : i32
    %c0_i32_0 = arith.constant 0 : i32
    return %arg0, %c0_i32 : i32, i32
  }
}

</mosaic_0001>

<bundles_post_ra>
// kernel: smooth_l1_aj_loss.1
= control target key start
LH: loop header
LB: loop body
LE: loop exit
PB: predicated region body
PF: predicated region fallthrough
CT: control target
= control target key end

     0   :  { %vm124_vm1 = vcmask 1042432   ;;  %vm143_vm13 = vcmask 1040384   ;;  %s213_s0 = inlined_call_operand.vmem [shape: f32[3,8,128], index: 0, kind: input, shape index: {}]   ;;  %s214_s1 = inlined_call_operand.vmem [shape: f32[1,128], index: 1, kind: output, shape index: {}]  }
   0x1   :  { %v8_v0 = vld [vmem:[%s213_s0] sm:$0xff]  ;;  %v160_v1 = vld [vmem:[%s213_s0 + $0x8] sm:$0xff]  ;;  %v195_v19 = vld [vmem:[%s213_s0 + $0x10] sm:$0xff] }
   0x2   :  { %v15_v2 = vmul.f32 %v8_v0, %v8_v0  ;;  %v16_v3 = vmul.f32 %v160_v1, %v160_v1  ;;  %v13_v4 = vsub.f32 %v8_v0, %v160_v1  ;;  %v34_v42 = vrot.slane %v195_v19, 1 }
   0x3   :  { %v112_v48 = vrot.slane %v195_v19, 2 }
   0x4   :  { %v39_v5 = vrot.slane %v15_v2, 1  ;;  %v17_v6 = vand.u32 2147483647, %v13_v4  ;;  %v48_v7 = vrot.slane %v16_v3, 7  ;;  %v14_v9 = vmul.f32 %v13_v4, %v13_v4 }
   0x5   :  { %v85_v18 = vrot.slane %v16_v3, 1  ;;  %v75_v28 = vrot.slane %v15_v2, 2  ;;  %v92_v30 = vrot.slane %v16_v3, 2  ;;  %v36_v51 = vadd.f32 %v195_v19, %v34_v42 }
   0x6   :  { %v41_v8 = vsub.f32 %v15_v2, %v39_v5  ;;  %v50_v10 = vsub.f32 %v16_v3, %v48_v7  ;;  %v117_v13 = vmul.f32 0.5, %v14_v9  ;;  %v163_v14 = vadd.f32 -0.5, %v17_v6 }
   0x7   :  { %vm116_vm0 = vcmp.lt.f32.partialorder %v17_v6, 1.0  ;;  %v19_v15 = vrot.slane %v14_v9, 1  ;;  %v70_v24 = vadd.f32 %v39_v5, %v15_v2  ;;  %v87_v25 = vadd.f32 %v85_v18, %v16_v3 }
   0x8   :  { %v42_v11 = vand.u32 2147483647, %v41_v8  ;;  %v51_v12 = vand.u32 2147483647, %v50_v10  ;;  %v119_v22 = vsel %vm116_vm0, %v117_v13, %v163_v14 }
   0x9   :  { %v197_v23 = vadd.f32 %v19_v15, %v14_v9  ;;  %v120_v26 = vmul.f32 %v195_v19, %v119_v22 }
   0xa   :  { %v44_v16 = vrot.slane %v42_v11, 6  ;;  %v53_v17 = vrot.slane %v51_v12, 7 }
   0xb   :  { %v122_v33 = vrot.slane %v120_v26, 2  ;;  %vm24_vm6 = vcmp.eq.f32.partialorder %v197_v23, inf  ;;  %v27_v55 = vand.u32 2147483648, %v197_v23  ;;  %vm26_vm11 = vcmp.eq.f32.partialorder %v197_v23, 0.0 }
   0xc   :  { %v46_v20 = vadd.f32 %v44_v16, %v15_v2  ;;  %v55_v21 = vadd.f32 %v53_v17, %v16_v3  ;;  %v114_v3 = vadd.f32 %v112_v48, %v36_v51  ;;  %v30_v11 = vmul.f32 0.5, %v197_v23 }
   0xd   :  { %v125_v36 = vsel %vm124_vm1, %v122_v33, 0.0  ;;  %v37_v16 = vmul.f32 0.5, %v36_v51 }
   0xe   :  { %166 = vrsqrt.f32 %v46_v20  ;;  %v72_v27 = vrot.slane %v46_v20, 2  ;;  %v89_v29 = vrot.slane %v55_v21, 2  ;;  %vm58_vm2 = vcmp.eq.f32.partialorder %v46_v20, inf }
   0xf   :  { %168 = vrsqrt.f32 %v55_v21  ;;  %vm65_vm3 = vcmp.eq.f32.partialorder %v55_v21, inf  ;;  %v126_v41 = vrot.slane %v125_v36, 4  ;;  %v61_v43 = vand.u32 2147483648, %v46_v20 }
  0x10   :  { %170 = vrsqrt.f32 %v197_v23  ;;  %v74_v31 = vadd.f32 %v72_v27, %v70_v24  ;;  %v91_v32 = vadd.f32 %v89_v29, %v87_v25  ;;  %v68_v44 = vand.u32 2147483648, %v55_v21 }
  0x11   :  { %vm60_vm4 = vcmp.eq.f32.partialorder %v46_v20, 0.0  ;;  %vm67_vm5 = vcmp.eq.f32.partialorder %v55_v21, 0.0  ;;  %v127_v49 = vadd.f32 %v126_v41, %v125_v36  ;;  %v115_v10 = vmul.f32 0.33333334, %v114_v3 }
  0x12   :  { %v77_v34 = vadd.f32 %v75_v28, %v74_v31  ;;  %v94_v35 = vadd.f32 %v92_v30, %v91_v32 }
  0x13   :  { %v128_v62 = vrot.slane %v127_v49, 2  ;;  %v134_v18 = vrot.slane %v115_v10, 6 }
  0x14   :  { %172 = vrsqrt.f32 %v77_v34  ;;  %vm80_vm7 = vcmp.eq.f32.partialorder %v77_v34, inf  ;;  %v83_v56 = vand.u32 2147483648, %v77_v34  ;;  %vm82_vm8 = vcmp.eq.f32.partialorder %v77_v34, 0.0 }
  0x15   :  { %174 = vrsqrt.f32 %v94_v35  ;;  %vm97_vm9 = vcmp.eq.f32.partialorder %v94_v35, inf  ;;  %v100_v59 = vand.u32 2147483648, %v94_v35  ;;  %vm99_vm10 = vcmp.eq.f32.partialorder %v94_v35, 0.0 }
  0x16   :  { %v129_v8 = vadd.f32 %v128_v62, %v127_v49 }
  0x18   :  { %v167_v37 = vpop.eup %166  ;;  %v130_v15 = vrot.slane %v129_v8, 1 }
  0x19   :  { %v169_v38 = vpop.eup %168  ;;  %v57_v39 = vmul.f32 %v167_v37, %v46_v20 }
  0x1a   :  { %v64_v40 = vmul.f32 %v169_v38, %v55_v21  ;;  %v171_v45 = vpop.eup %170 }
  0x1b   :  { %v59_v46 = vsel %vm58_vm2, %v46_v20, %v57_v39  ;;  %v23_v50 = vmul.f32 %v171_v45, %v197_v23 }
  0x1c   :  { %v66_v47 = vsel %vm65_vm3, %v55_v21, %v64_v40  ;;  %v62_v52 = vsel %vm60_vm4, %v61_v43, %v59_v46  ;;  %v131_v21 = vadd.f32 %v130_v15, %v129_v8 }
  0x1d   :  { %v69_v53 = vsel %vm67_vm5, %v68_v44, %v66_v47  ;;  %v25_v63 = vsel %vm24_vm6, %v197_v23, %v23_v50 }
  0x1e   :  { %v173_v54 = vpop.eup %172  ;;  %v103_v61 = vsub.f32 %v62_v52, %v69_v53  ;;  %v28_v5 = vsel %vm26_vm11, %v27_v55, %v25_v63  ;;  %v141_v26 = vmul.f32 0.33333334, %v131_v21 }
  0x1f   :  { %v175_v57 = vpop.eup %174  ;;  %v79_v58 = vmul.f32 %v173_v54, %v77_v34  ;;  %v162_v12 = vadd.f32 -0.5, %v28_v5  ;;  %vm29_vm12 = vcmp.le.f32.partialorder %v28_v5, 1.0 }
  0x20   :  { %v96_v60 = vmul.f32 %v175_v57, %v94_v35  ;;  %v104_v7 = vand.u32 2147483647, %v103_v61 }
  0x21   :  { %v81_v0 = vsel %vm80_vm7, %v77_v34, %v79_v58  ;;  %v32_v19 = vsel %vm29_vm12, %v30_v11, %v162_v12 }
  0x22   :  { %v84_v1 = vsel %vm82_vm8, %v83_v56, %v81_v0  ;;  %v98_v2 = vsel %vm97_vm9, %v94_v35, %v96_v60  ;;  %v105_v13 = vmul.f32 0.5, %v104_v7  ;;  %v132_v22 = vmul.f32 %v37_v16, %v32_v19 }
  0x23   :  { %v101_v4 = vsel %vm99_vm10, %v100_v59, %v98_v2 }
  0x24   :  { %v102_v6 = vsub.f32 %v84_v1, %v101_v4 }
  0x26   :  { %v106_v9 = vand.u32 2147483647, %v102_v6 }
  0x28   :  { %v107_v14 = vmul.f32 0.1, %v106_v9 }
  0x2a   :  { %v109_v17 = vrot.slane %v107_v14, 6 }
  0x2c   :  { %v111_v20 = vadd.f32 %v109_v17, %v105_v13 }
  0x2e   :  { %v136_v24 = vmul.f32 %v134_v18, %v111_v20 }
  0x30   :  { %v138_v25 = vrot.slane %v136_v24, 4 }
  0x32   :  { %v140_v27 = vadd.f32 %v138_v25, %v132_v22 }
  0x34   :  { %v142_v28 = vadd.f32 %v141_v26, %v140_v27 }
  0x36   :  { %v144_v29 = vsel %vm143_vm13, %v142_v28, 0.0 }
  0x37   :  { %145 = vadd.xlane.f32.xlu0 %v144_v29 }
  0xc4   :  { %v146_v23 = vpop.xlane.xlu0 %145 }
  0xc5   :  { %v147_v30 = vrot.slane %v146_v23, 4 }
  0xc7   :  { %v148_v31 = vadd.f32 %v147_v30, %v146_v23 }
  0xc9   :  { %v149_v32 = vrot.slane %v148_v31, 2 }
  0xcb   :  { %v150_v33 = vadd.f32 %v149_v32, %v148_v31 }
  0xcd   :  { %v151_v34 = vrot.slane %v150_v33, 1 }
  0xcf   :  { %v152_v35 = vadd.f32 %v151_v34, %v150_v33 }
  0xd1   :  { %164 = vpush %v152_v35 }
 0x102   :  { %s165_s0 = spop %164 }
 0x103   :  { %v154_v36 = vstv %s165_s0 }
 0x104   :  { %155 = vst [vmem:[%s214_s1] sm:$0x1] %v154_v36 }

</bundles_post_ra>
